<compile_context>
chip_gen: v7x
topology: tpu7x:2x2x1
jax: 0.10.0
libtpu: 0.0.40
codegen_flags: <defaults>
</compile_context>

<pallas_src>
import jax
import jax.numpy as jnp
from jax.experimental import pallas as pl
from jax.experimental.pallas import tpu as pltpu

_LANES = 128
_SUBLANES = 8
_ACC_SPLIT = 8                      # parallel accumulator chains per block
_ACC_ROWS = _ACC_SPLIT * _SUBLANES  # 64: per-block partial is (64, 128)
_MAX_TILE_BYTES = 2 * 1024 * 1024   # 2 MiB per input per grid step
_MIN_BLOCK_BYTES = 1 * 1024 * 1024  # force >=2 blocks once each gets >=1 MiB


def _mse_partial_kernel(pred_ref, gt_ref, out_ref):
    # Cast to f32 before arithmetic (f32 accumulation regardless of input
    # dtype; keeps v5e happy for bf16 inputs).
    p = pred_ref[...].astype(jnp.float32)
    g = gt_ref[...].astype(jnp.float32)
    d = p - g
    sq = d * d
    # Fold the (tile_rows, 128) block down to a (64, 128) partial: the major
    # axis reduce runs as 8 independent vreg accumulation chains (VPU adds
    # only, no cross-lane reduce here).
    out_ref[...] = sq.reshape(-1, _ACC_ROWS, _LANES).sum(axis=0)


def _round_up(x: int, m: int) -> int:
    return ((x + m - 1) // m) * m


@jax.jit
def vert_reg_loss(predvert: jax.Array, gtvert: jax.Array) -> jax.Array:
    """MSE loss (mean reduction) between predvert and gtvert.

    predvert, gtvert: (batch, num_verts, coord_dim), any float dtype.
    Returns a float32 scalar.
    """
    assert predvert.shape == gtvert.shape, "pred/gt shapes must match"

    n_elems = 1
    for s in predvert.shape:
        n_elems *= int(s)

    itemsize = jnp.dtype(predvert.dtype).itemsize

    # Lane-dense layout: (rows, 128).
    rows = pl.cdiv(n_elems, _LANES)

    # Byte-budgeted tile sizing + even split of the real rows.
    max_tile_rows = max(_MAX_TILE_BYTES // (_LANES * itemsize), _ACC_ROWS)
    num_blocks = pl.cdiv(rows, max_tile_rows)
    if num_blocks == 1 and rows * _LANES * itemsize >= 2 * _MIN_BLOCK_BYTES:
        num_blocks = 2  # let the two v7x TensorCores split mid-size inputs
    tile_rows = _round_up(pl.cdiv(rows, num_blocks), _ACC_ROWS)
    num_blocks = pl.cdiv(rows, tile_rows)
    rows_padded = num_blocks * tile_rows
    padded_elems = rows_padded * _LANES

    def _prep(x):
        flat = x.reshape(-1)
        if padded_elems > n_elems:
            flat = jnp.pad(flat, (0, padded_elems - n_elems))  # zero padding
        return flat.reshape(rows_padded, _LANES)

    p2 = _prep(predvert)
    g2 = _prep(gtvert)

    out_rows = num_blocks * _ACC_ROWS
    partials = pl.pallas_call(
        _mse_partial_kernel,
        out_shape=jax.ShapeDtypeStruct((out_rows, _LANES), jnp.float32),
        grid=(num_blocks,),
        in_specs=[
            pl.BlockSpec((tile_rows, _LANES), lambda i: (i, 0)),
            pl.BlockSpec((tile_rows, _LANES), lambda i: (i, 0)),
        ],
        out_specs=pl.BlockSpec((_ACC_ROWS, _LANES), lambda i: (i, 0)),
        compiler_params=pltpu.CompilerParams(
            dimension_semantics=("parallel",),
        ),
        cost_estimate=pl.CostEstimate(
            flops=3 * n_elems,
            transcendentals=0,
            bytes_accessed=2 * n_elems * itemsize + out_rows * _LANES * 4,
        ),
    )(p2, g2)

    # Finish the reduction and apply the mean with the *unpadded* count.
    return jnp.sum(partials) * (1.0 / float(n_elems))


if __name__ == "__main__":
    key = jax.random.PRNGKey(0)
    k1, k2, k3, k4, k5, k6 = jax.random.split(key, 6)

    # Small shapes consistent with the module: (batch, num_verts, 3)
    batch, num_verts, coord = 2, 64, 3
    predvert = jax.random.normal(k1, (batch, num_verts, coord), dtype=jnp.float32)
    gtvert = jax.random.normal(k2, (batch, num_verts, coord), dtype=jnp.float32)

    loss = jax.block_until_ready(vert_reg_loss(predvert, gtvert))
    ref = jnp.mean((predvert - gtvert) ** 2)
    assert jnp.allclose(loss, ref, rtol=1e-6, atol=1e-6), (loss, ref)

    # Larger mesh: single block, near-zero padding with even-split tiling.
    big_pred = jax.random.normal(k3, (2, 30000, 3), dtype=jnp.float32)
    big_gt = jax.random.normal(k4, (2, 30000, 3), dtype=jnp.float32)
    big_loss = jax.block_until_ready(vert_reg_loss(big_pred, big_gt))
    big_ref = jnp.mean((big_pred - big_gt) ** 2)
    assert jnp.allclose(big_loss, big_ref, rtol=1e-5, atol=1e-6), (big_loss, big_ref)

    # Even larger mesh to exercise the multi-block (grid >= 2) tiled path.
    huge_pred = jax.random.normal(k5, (4, 70000, 3), dtype=jnp.float32)
    huge_gt = jax.random.normal(k6, (4, 70000, 3), dtype=jnp.float32)
    huge_loss = jax.block_until_ready(vert_reg_loss(huge_pred, huge_gt))
    huge_ref = jnp.mean((huge_pred - huge_gt) ** 2)
    assert jnp.allclose(huge_loss, huge_ref, rtol=1e-5, atol=1e-6), (huge_loss, huge_ref)

    # bf16 inputs exercise the dtype-aware (byte-budgeted) tile sizing.
    pb = predvert.astype(jnp.bfloat16)
    gb = gtvert.astype(jnp.bfloat16)
    bf_loss = jax.block_until_ready(vert_reg_loss(pb, gb))
    bf_ref = jnp.mean((pb.astype(jnp.float32) - gb.astype(jnp.float32)) ** 2)
    assert jnp.allclose(bf_loss, bf_ref, rtol=1e-5, atol=1e-6), (bf_loss, bf_ref)

    print("KERNEL_OK")
</pallas_src>

<mosaic_0001>
module attributes {stable_mosaic.version = 11 : i64} {
  func.func @_mse_partial_kernel(%arg0: i32, %arg1: memref<64x128xf32, #tpu.memory_space<vmem>>, %arg2: memref<64x128xf32, #tpu.memory_space<vmem>>, %arg3: memref<64x128xf32, #tpu.memory_space<vmem>>) attributes {dimension_semantics = [#tpu.dimension_semantics<parallel>], iteration_bounds = array<i64: 1>, scalar_prefetch = 0 : i64, scratch_operands = 0 : i64, tpu.core_type = #tpu.core_type<tc>, window_params = [{transform_indices = @transform_0, window_bounds = array<i64: 64, 128>}, {transform_indices = @transform_1, window_bounds = array<i64: 64, 128>}, {transform_indices = @transform_2, window_bounds = array<i64: 64, 128>}]} {
    %c0 = arith.constant 0 : index
    %c0_0 = arith.constant 0 : index
    %0 = vector.load %arg1[%c0, %c0_0] : memref<64x128xf32, #tpu.memory_space<vmem>>, vector<64x128xf32>
    %c0_1 = arith.constant 0 : index
    %c0_2 = arith.constant 0 : index
    %1 = vector.load %arg2[%c0_1, %c0_2] : memref<64x128xf32, #tpu.memory_space<vmem>>, vector<64x128xf32>
    %2 = arith.subf %0, %1 : vector<64x128xf32>
    %3 = arith.mulf %2, %2 : vector<64x128xf32>
    %4 = vector.shape_cast %3 : vector<64x128xf32> to vector<1x64x128xf32>
    %cst = arith.constant dense<0.000000e+00> : vector<64x128xf32>
    %5 = vector.multi_reduction <add>, %4, %cst [0] : vector<1x64x128xf32> to vector<64x128xf32>
    %c0_3 = arith.constant 0 : index
    %c0_4 = arith.constant 0 : index
    %6 = vector.load %arg3[%c0_3, %c0_4] : memref<64x128xf32, #tpu.memory_space<vmem>>, vector<64x128xf32>
    tpu.vector_store %arg3[%c0_3, %c0_4], %5 {strides = array<i32>} : memref<64x128xf32, #tpu.memory_space<vmem>>, vector<64x128xf32>,
    return
  }
  func.func @transform_0(%arg0: i32) -> (i32, i32) {
    %c0_i32 = arith.constant 0 : i32
    %c0_i32_0 = arith.constant 0 : i32
    return %arg0, %c0_i32 : i32, i32
  }
  func.func @transform_1(%arg0: i32) -> (i32, i32) {
    %c0_i32 = arith.constant 0 : i32
    %c0_i32_0 = arith.constant 0 : i32
    return %arg0, %c0_i32 : i32, i32
  }
  func.func @transform_2(%arg0: i32) -> (i32, i32) {
    %c0_i32 = arith.constant 0 : i32
    %c0_i32_0 = arith.constant 0 : i32
    return %arg0, %c0_i32 : i32, i32
  }
}

</mosaic_0001>

<bundles_post_ra>
// kernel: vert_reg_loss.1
= control target key start
LH: loop header
LB: loop body
LE: loop exit
PB: predicated region body
PF: predicated region fallthrough
CT: control target
= control target key end

     0   :  { %s150_s0 = inlined_call_operand.vmem [shape: f32[64,128], index: 0, kind: input, shape index: {}]   ;;  %s151_s1 = inlined_call_operand.vmem [shape: f32[64,128], index: 1, kind: input, shape index: {}]   ;;  %s152_s2 = inlined_call_operand.vmem [shape: f32[64,128], index: 2, kind: output, shape index: {}]  }
   0x1   :  { %v11_v0 = vld [vmem:[%s150_s0] sm:$0xff]  ;;  %v12_v2 = vld [vmem:[%s150_s0 + $0x8] sm:$0xff]  ;;  %v13_v5 = vld [vmem:[%s150_s0 + $0x10] sm:$0xff] }
   0x2   :  { %v19_v1 = vld [vmem:[%s151_s1] sm:$0xff]  ;;  %v20_v4 = vld [vmem:[%s151_s1 + $0x8] sm:$0xff]  ;;  %v21_v6 = vld [vmem:[%s151_s1 + $0x10] sm:$0xff] }
   0x3   :  { %v27_v3 = vsub.f32 %v11_v0, %v19_v1  ;;  %v28_v7 = vsub.f32 %v12_v2, %v20_v4  ;;  %v29_v8 = vsub.f32 %v13_v5, %v21_v6  ;;  %v14_v9 = vld [vmem:[%s150_s0 + $0x18] sm:$0xff]  ;;  %v15_v11 = vld [vmem:[%s150_s0 + $0x20] sm:$0xff]  ;;  %v16_v15 = vld [vmem:[%s150_s0 + $0x28] sm:$0xff] }
   0x4   :  { %v22_v10 = vld [vmem:[%s151_s1 + $0x18] sm:$0xff]  ;;  %v23_v14 = vld [vmem:[%s151_s1 + $0x20] sm:$0xff]  ;;  %v24_v16 = vld [vmem:[%s151_s1 + $0x28] sm:$0xff] }
   0x5   :  { %v35_v12 = vmul.f32 %v27_v3, %v27_v3  ;;  %v30_v13 = vsub.f32 %v14_v9, %v22_v10  ;;  %v36_v17 = vmul.f32 %v28_v7, %v28_v7  ;;  %v37_v18 = vmul.f32 %v29_v8, %v29_v8  ;;  %v17_v21 = vld [vmem:[%s150_s0 + $0x30] sm:$0xff]  ;;  %v18_v23 = vld [vmem:[%s150_s0 + $0x38] sm:$0xff] }
   0x6   :  { %v31_v19 = vsub.f32 %v15_v11, %v23_v14  ;;  %v32_v20 = vsub.f32 %v16_v15, %v24_v16  ;;  %v25_v22 = vld [vmem:[%s151_s1 + $0x30] sm:$0xff]  ;;  %v26_v26 = vld [vmem:[%s151_s1 + $0x38] sm:$0xff] }
   0x7   :  { %51 = vst [vmem:[%s152_s2] sm:$0xff] %v35_v12  ;;  %v38_v24 = vmul.f32 %v30_v13, %v30_v13  ;;  %v33_v25 = vsub.f32 %v17_v21, %v25_v22  ;;  %52 = vst [vmem:[%s152_s2 + $0x8] sm:$0xff] %v36_v17  ;;  %v34_v29 = vsub.f32 %v18_v23, %v26_v26 }
   0x8   :  { %53 = vst [vmem:[%s152_s2 + $0x10] sm:$0xff] %v37_v18  ;;  %v39_v27 = vmul.f32 %v31_v19, %v31_v19  ;;  %v40_v28 = vmul.f32 %v32_v20, %v32_v20 }
   0x9   :  { %54 = vst [vmem:[%s152_s2 + $0x18] sm:$0xff] %v38_v24  ;;  %v41_v30 = vmul.f32 %v33_v25, %v33_v25  ;;  %v42_v31 = vmul.f32 %v34_v29, %v34_v29 }
   0xa   :  { %55 = vst [vmem:[%s152_s2 + $0x20] sm:$0xff] %v39_v27  ;;  %56 = vst [vmem:[%s152_s2 + $0x28] sm:$0xff] %v40_v28 }
   0xb   :  { %57 = vst [vmem:[%s152_s2 + $0x30] sm:$0xff] %v41_v30  ;;  %58 = vst [vmem:[%s152_s2 + $0x38] sm:$0xff] %v42_v31 }

</bundles_post_ra>
